<compile_context>
chip_gen: v7x
topology: tpu7x:2x2x1
jax: 0.10.0
libtpu: 0.0.40
codegen_flags: <defaults>
</compile_context>

<pallas_src>
import functools

import jax
import jax.numpy as jnp
from jax.experimental import pallas as pl
from jax.experimental.pallas import tpu as pltpu


def _her2_fc_kernel(x_ref, w_ref, b_ref, o_ref):
    # [TB, IN] @ [IN, OUT] with f32 accumulation on the MXU; bias add on the VPU.
    acc = jnp.dot(x_ref[...], w_ref[...], preferred_element_type=jnp.float32)
    o_ref[...] = (acc + b_ref[...]).astype(o_ref.dtype)


def _her2_fc_small(x, w, b2):
    """Single-tile path: no grid, no pipeline — everything lives in VMEM."""
    B, _ = x.shape
    OUT = w.shape[1]
    return pl.pallas_call(
        _her2_fc_kernel,
        out_shape=jax.ShapeDtypeStruct((B, OUT), x.dtype),
        in_specs=[
            pl.BlockSpec(memory_space=pltpu.MemorySpace.VMEM),
            pl.BlockSpec(memory_space=pltpu.MemorySpace.VMEM),
            pl.BlockSpec(memory_space=pltpu.MemorySpace.VMEM),
        ],
        out_specs=pl.BlockSpec(memory_space=pltpu.MemorySpace.VMEM),
    )(x, w, b2)


def _her2_fc_tiled(x, w, b2, tb):
    """Batch-tiled path: stream x/out through VMEM, keep W and b resident."""
    B, IN = x.shape
    OUT = w.shape[1]
    assert B % tb == 0 and tb % 8 == 0, (B, tb)
    return pl.pallas_call(
        _her2_fc_kernel,
        out_shape=jax.ShapeDtypeStruct((B, OUT), x.dtype),
        grid=(B // tb,),
        in_specs=[
            pl.BlockSpec((tb, IN), lambda i: (i, 0)),
            pl.BlockSpec((IN, OUT), lambda i: (0, 0)),  # resident across steps
            pl.BlockSpec((1, OUT), lambda i: (0, 0)),   # resident across steps
        ],
        out_specs=pl.BlockSpec((tb, OUT), lambda i: (i, 0)),
        compiler_params=pltpu.CompilerParams(
            # "parallel" lets v7x shard batch tiles across its 2 TensorCores;
            # near-zero cost on single-TC v5e/v6e.
            dimension_semantics=("parallel",),
        ),
    )(x, w, b2)


@functools.partial(jax.jit, static_argnames=("tb", "small_max_bytes"))
def her2_fc(x, w, b2, *, tb=4096, small_max_bytes=4 << 20):
    """Pallas equivalent of nn.Linear(4, OUT).forward.

    x:  [B, 4]   float32
    w:  [4, OUT] float32  (transposed torch weight)
    b2: [1, OUT] float32
    returns: [B, OUT] float32
    """
    B, IN = x.shape
    OUT = w.shape[1]
    itemsize = jnp.dtype(x.dtype).itemsize
    resident_bytes = (B * IN + B * OUT) * itemsize  # x + out if kept whole in VMEM

    # Shapes are static under jit, so this dispatch happens at trace time.
    if resident_bytes <= small_max_bytes:
        return _her2_fc_small(x, w, b2)

    # Large-batch: big tiles amortize the ~0.35 us per grid-step overhead while
    # keeping the double-buffered VMEM footprint tiny (<2 MiB at tb=4096).
    tb = max(8, min(tb, B))
    tb = (tb // 8) * 8                      # (8,128)-safe sublane tiling
    pad = (-B) % tb
    if pad:
        x = jnp.pad(x, ((0, pad), (0, 0)))  # pad batch so the grid divides evenly
    out = _her2_fc_tiled(x, w, b2, tb)
    return out[:B] if pad else out


def bl_model_only_her2_forward(batch, params):
    """Mirrors BLModel_OnlyHer2.forward: dict with 'feat' and two None fields."""
    feat = her2_fc(batch["clinical_bl_her2"], params["w"], params["b"])
    return {"feat": feat, "mask_words_pred": None, "mask_bags_pred": None}


if __name__ == "__main__":
    key = jax.random.PRNGKey(0)
    kx, kw, kb, kx2, kx3 = jax.random.split(key, 5)

    B = 8                # small batch (single-tile path)
    IN_FEATURES = 4      # fixed by the module: nn.Linear(4, ...)
    OUT_FEATURES = 32    # opts.bl_out_features

    # Deterministic parameter init (Kaiming-uniform-like bound, as in nn.Linear).
    bound = 1.0 / (IN_FEATURES ** 0.5)
    w = jax.random.uniform(kw, (IN_FEATURES, OUT_FEATURES),
                           minval=-bound, maxval=bound, dtype=jnp.float32)
    b = jax.random.uniform(kb, (1, OUT_FEATURES),
                           minval=-bound, maxval=bound, dtype=jnp.float32)
    params = {"w": w, "b": b}

    # --- small-batch path (typical tiny clinical input) ---
    x = jax.random.normal(kx, (B, IN_FEATURES), dtype=jnp.float32)
    out = bl_model_only_her2_forward({"clinical_bl_her2": x}, params)
    feat = jax.block_until_ready(out["feat"])
    ref = x @ w + b
    assert feat.shape == (B, OUT_FEATURES)
    assert jnp.allclose(feat, ref, atol=1e-5, rtol=1e-5)
    assert out["mask_words_pred"] is None and out["mask_bags_pred"] is None

    # --- batch-tiled path, evenly divisible batch (exercise the grid path) ---
    B2, TB2 = 512, 128
    x2 = jax.random.normal(kx2, (B2, IN_FEATURES), dtype=jnp.float32)
    feat2 = jax.block_until_ready(her2_fc(x2, w, b, tb=TB2, small_max_bytes=0))
    ref2 = x2 @ w + b
    assert feat2.shape == (B2, OUT_FEATURES)
    assert jnp.allclose(feat2, ref2, atol=1e-5, rtol=1e-5)

    # --- batch-tiled path, non-divisible batch (exercise padding + slice) ---
    B3, TB3 = 300, 128
    x3 = jax.random.normal(kx3, (B3, IN_FEATURES), dtype=jnp.float32)
    feat3 = jax.block_until_ready(her2_fc(x3, w, b, tb=TB3, small_max_bytes=0))
    ref3 = x3 @ w + b
    assert feat3.shape == (B3, OUT_FEATURES)
    assert jnp.allclose(feat3, ref3, atol=1e-5, rtol=1e-5)

    print("KERNEL_OK")
</pallas_src>

<mosaic_0001>
module attributes {stable_mosaic.version = 11 : i64} {
  func.func @_her2_fc_kernel(%arg0: memref<8x4xf32, #tpu.memory_space<vmem>>, %arg1: memref<4x32xf32, #tpu.memory_space<vmem>>, %arg2: memref<1x32xf32, #tpu.memory_space<vmem>>, %arg3: memref<8x32xf32, #tpu.memory_space<vmem>>) attributes {dimension_semantics = [], scalar_prefetch = 0 : i64, scratch_operands = 0 : i64, tpu.core_type = #tpu.core_type<tc>} {
    %c0 = arith.constant 0 : index
    %c0_0 = arith.constant 0 : index
    %0 = vector.load %arg0[%c0, %c0_0] : memref<8x4xf32, #tpu.memory_space<vmem>>, vector<8x4xf32>
    %c0_1 = arith.constant 0 : index
    %c0_2 = arith.constant 0 : index
    %1 = vector.load %arg1[%c0_1, %c0_2] : memref<4x32xf32, #tpu.memory_space<vmem>>, vector<4x32xf32>
    %cst = arith.constant dense<0.000000e+00> : vector<8x32xf32>
    %2 = tpu.matmul %0, %1, %cst {dimension_numbers = #tpu.dot_dimension_numbers<[1], [0], [0], [1], [0, 0, 1, 1], [], []>} : vector<8x4xf32>, vector<4x32xf32>, vector<8x32xf32> -> vector<8x32xf32>
    %c0_3 = arith.constant 0 : index
    %c0_4 = arith.constant 0 : index
    %3 = vector.load %arg2[%c0_3, %c0_4] : memref<1x32xf32, #tpu.memory_space<vmem>>, vector<1x32xf32>
    %4 = vector.broadcast %3 : vector<1x32xf32> to vector<8x32xf32>
    %5 = arith.addf %2, %4 : vector<8x32xf32>
    %c0_5 = arith.constant 0 : index
    %c0_6 = arith.constant 0 : index
    %6 = vector.load %arg3[%c0_5, %c0_6] : memref<8x32xf32, #tpu.memory_space<vmem>>, vector<8x32xf32>
    tpu.vector_store %arg3[%c0_5, %c0_6], %5 {strides = array<i32>} : memref<8x32xf32, #tpu.memory_space<vmem>>, vector<8x32xf32>,
    return
  }
}

</mosaic_0001>

<bundles_post_ra>
// kernel: her2_fc.1
= control target key start
LH: loop header
LB: loop body
LE: loop exit
PB: predicated region body
PF: predicated region fallthrough
CT: control target
= control target key end

     0   :  { %vm28_vm0 = vcmask 1043456   ;;  %v155_v2 = vmov 0.0   ;;  %vm156_vm1 = vmmov 0   ;;  %vm24_vm2 = vcmask 31744   ;;  %s199_s0 = inlined_call_operand.vmem [shape: f32[8,4], index: 0, kind: input, shape index: {}]   ;;  %s200_s1 = inlined_call_operand.vmem [shape: f32[4,32], index: 1, kind: input, shape index: {}]   ;;  %s201_s2 = inlined_call_operand.vmem [shape: f32[1,32], index: 2, kind: input, shape index: {}]   ;;  %s202_s3 = inlined_call_operand.hbm [shape: f32[8,32], index: 3, kind: output, shape index: {}]  }
   0x1   :  { %v16_v0 = vld [vmem:[%s200_s1] sm:$0xf]  ;;  %123 = vmatprep.subr.mxu0 %v155_v2  ;;  %125 = vmatprep.mubr.msk.f32.mxu0 %vm156_vm1, %v155_v2 }
   0x2   :  { %v15_v1 = vld [vmem:[%s199_s0] sm:$0xff] }
   0x3   :  { %8 = vsyncpa [#allocation3], 0  ;;  %124 = vmatpush3.msk.msra.mxu0 %vm28_vm0, %v16_v0  ;;  %v118_v3 = vld [vmem:[%s201_s2] ss:$0 sm:$0xff]  ;;  %s157_s18 = smov [#allocation2]   ;;  %vm102_vm3 = vcmask 261120  }
   0x4   :  { %126 = vmatmul.mubr.msk.f32.vlgmr.msra.gmra.mrb[0].mxu0 %vm24_vm2, %v15_v1  ;;  %s110_s19 = sshll.u32 %s157_s18, 4  ;;  %s111_s19 = int_to_ptr.vmem [resolvable:$true] %s110_s19 }
   0x5   :  { %s131_s0 = scalar_lea.vmem %s111_s19, 128  ;;  %p136_p1 = scmp.lt.s32.totalorder %s111_s19, %s111_s19 }
   0x6   :  { %p132_p0 = scmp.ne.s32.totalorder %s111_s19, %s131_s0  ;;  %p137_p2 = scmp.lt.s32.totalorder %s131_s0, %s131_s0 }
   0x8   :  { %p138_p3 = por %p137_p2, %p136_p1 }
   0xa   :  { %p139_p4 = pnand %p138_p3, %p132_p0 }
  0xd7   :  { %v98_v4 = vpop.f32.mrb[0].mxu0 }
  0xd8   :  { %v99_v5 = vadd.f32 %v118_v3, %v98_v4  ;;  %v127_v6 = vpop.f32.mrb[1].mxu0 }
  0xda   :  { %103 = vst.msk [vmem:[#allocation2] sm:$0xff] %vm102_vm3, %v99_v5 }
  0xdb   :  { %142 = shalt.err (!%p139_p4)
}
  0xdc   :  { %s143_s21 = scalar_lea.hbm %s202_s3, 128 }
  0xdd   :  { %p144_p5 = scmp.ne.s32.totalorder %s202_s3, %s143_s21  ;;  %p147_p6 = scmp.lt.u32.totalorder %s143_s21, %s202_s3 }
  0xdf   :  { %p149_p7 = pnand %p147_p6, %p144_p5 }
  0xe1   :  { %152 = shalt.err (!%p149_p7)
}
  0xe2   :  { %113 = dma.vmem_to_hbm [thread:$0]  %s111_s19, 128, %s202_s3, [#allocation3]  }
  0xe3   :  { %153 = dma.done.wait [#allocation3], 128  }
  0xe4   :  { %154 = vsyncadd [#allocation3], 4294967168 }
  0xe5   :  { %117 = vsyncpa [#allocation3], 1 }

</bundles_post_ra>
